<compile_context>
chip_gen: v6e
topology: v6e:2x2x1
jax: 0.10.0
libtpu: 0.0.40
codegen_flags: <defaults>
</compile_context>

<pallas_src>
import functools

import jax
import jax.numpy as jnp
from jax import lax
from jax.experimental import pallas as pl
from jax.experimental.pallas import tpu as pltpu


_ONE_HOT_MAX_VOCAB = 1024          # use the MXU one-hot path up to this vocab
_VMEM_TABLE_BUDGET = 44 * 2**20    # resident-table budget (v7x: 64 MiB VMEM/TC)


def _round_up(x, m):
    return ((x + m - 1) // m) * m


def _vmem_limit(needed_bytes):
    # Raise the scoped-VMEM cap above the conservative defaults (16/32 MiB)
    # when the resident table needs it, but stay well under v7x's 64 MiB/TC.
    return int(min(max(needed_bytes, 32 << 20), 60 << 20))


def _default_token_tile(n_tok, embed_dim, itemsize):
    # Big output slabs (~512 KiB) so the ~0.35 us/grid-step pipeline overhead
    # is amortized (128-row tiles reach only ~30% of HBM roofline, 512+ ~85%),
    # but keep >= 2 grid steps when possible (v7x has two TensorCores) and
    # prefer tiles that divide n_tok (no padding, no output slice afterwards).
    target = max(8, ((512 * 1024) // max(1, embed_dim * itemsize)) // 8 * 8)
    target = min(target, 2048)
    while target > 8 and 2 * target > n_tok:
        target //= 2
    target = max(8, target // 8 * 8)
    t = target
    while t > 8 and n_tok % t:
        t -= 8
    return t if (t >= 8 and n_tok % t == 0) else target


# ----------------------------------------------------------------------------
# Path 1: small vocab -- one-hot @ table on the MXU.
# ----------------------------------------------------------------------------
def _embed_onehot_kernel(ids_ref, table_ref, o_ref):
    # ids_ref:   VMEM (token_tile, 1) int32
    # table_ref: VMEM (vocab_pad, embed_dim), constant index_map -> resident
    # o_ref:     VMEM (token_tile, embed_dim)
    ids = ids_ref[...]                                               # (T, 1)
    classes = lax.broadcasted_iota(
        jnp.int32, (ids.shape[0], table_ref.shape[0]), 1)            # (T, Vp)
    one_hot = (ids == classes).astype(table_ref.dtype)               # exact 0/1
    o_ref[...] = jnp.dot(
        one_hot, table_ref[...], preferred_element_type=jnp.float32
    ).astype(o_ref.dtype)


# ----------------------------------------------------------------------------
# Path 2: VMEM-resident table -- grouped row gather, coalesced (8, E) stores.
# ----------------------------------------------------------------------------
def _embed_gather_vmem_kernel(ids_ref, table_ref, o_ref, *, token_tile):
    # ids_ref:   SMEM (n_total,) int32 (whole id array resident in SMEM)
    # table_ref: VMEM (vocab, embed_dim), constant index_map -> resident
    # o_ref:     VMEM (token_tile, embed_dim)
    tile_base = pl.program_id(0) * token_tile
    n_groups = token_tile // 8
    unroll = 4 if n_groups % 4 == 0 else (2 if n_groups % 2 == 0 else 1)

    def gather_group(g, carry):
        base = pl.multiple_of(g * 8, 8)
        # Eight (1, E) dynamic row loads stacked (XLU) into one full-sublane
        # (8, E) store -- avoids single-sublane masked vst's.
        rows = [
            table_ref[pl.ds(ids_ref[tile_base + base + j], 1), :]
            for j in range(8)
        ]
        o_ref[pl.ds(base, 8), :] = jnp.concatenate(rows, axis=0)
        return carry

    lax.fori_loop(0, n_groups, gather_group, 0, unroll=unroll)


# ----------------------------------------------------------------------------
# Path 3: table too large for VMEM -- DMA row-gather straight from HBM into
# the current output block (all copies in flight before the drain, i.e.
# maximally deep buffering with zero extra VMEM).
# ----------------------------------------------------------------------------
def _embed_gather_hbm_kernel(ids_ref, table_ref, o_ref, copy_sem, *, token_tile):
    # ids_ref:   SMEM (n_total,) int32
    # table_ref: HBM (pl.ANY) (vocab, embed_dim)
    # o_ref:     VMEM (token_tile, embed_dim)
    tile_base = pl.program_id(0) * token_tile

    def issue(i, carry):
        tok = ids_ref[tile_base + i]
        pltpu.make_async_copy(
            table_ref.at[pl.ds(tok, 1), :],
            o_ref.at[pl.ds(i, 1), :],
            copy_sem,
        ).start()
        return carry

    lax.fori_loop(0, token_tile, issue, 0, unroll=8)

    def drain(i, carry):
        # Same-sized descriptor; waits for one row's worth of completion.
        pltpu.make_async_copy(
            table_ref.at[pl.ds(0, 1), :],
            o_ref.at[pl.ds(0, 1), :],
            copy_sem,
        ).wait()
        return carry

    lax.fori_loop(0, token_tile, drain, 0, unroll=8)


# ----------------------------------------------------------------------------
# Wrapper: nn.Embedding(weight_mat)(ids).permute(1, 0, 2)
# ----------------------------------------------------------------------------
def embedding_layer(ids, weight_mat, token_tile=None):
    """ids: (batch, seq_len) int; weight_mat: (vocab_size, embed_dim).

    Returns (seq_len, batch, embed_dim), matching the PyTorch module.
    """
    batch, seq_len = ids.shape
    vocab_size, embed_dim = weight_mat.shape
    n_tok = batch * seq_len
    itemsize = jnp.dtype(weight_mat.dtype).itemsize

    # Seq-major flatten (ids.T): the kernel then writes the permuted layout
    # directly and the final reshape to (seq, batch, E) is free.  Clip ids so
    # out-of-range tokens can never index OOB inside the kernel.
    flat_ids = jnp.clip(ids.T.reshape(-1).astype(jnp.int32), 0, vocab_size - 1)

    if token_tile is None:
        token_tile = _default_token_tile(n_tok, embed_dim, itemsize)
    token_tile = max(8, _round_up(min(token_tile, _round_up(n_tok, 8)), 8))

    n_pad = (-n_tok) % token_tile
    if n_pad:  # padded tokens gather row 0 and are dropped afterwards
        flat_ids = jnp.concatenate([flat_ids, jnp.zeros((n_pad,), jnp.int32)])
    n_total = n_tok + n_pad
    grid = (n_total // token_tile,)

    out_block_bytes = token_tile * embed_dim * itemsize
    table_bytes = vocab_size * embed_dim * itemsize
    out_shape = jax.ShapeDtypeStruct((n_total, embed_dim), weight_mat.dtype)
    out_spec = pl.BlockSpec((token_tile, embed_dim), lambda t: (t, 0))
    out_bytes = n_total * embed_dim * itemsize

    if vocab_size <= _ONE_HOT_MAX_VOCAB:
        # ---- small-vocab fast path: one-hot matmul on the MXU --------------
        vocab_pad = _round_up(vocab_size, 128)
        table_p = weight_mat
        if vocab_pad != vocab_size:
            table_p = jnp.pad(weight_mat, ((0, vocab_pad - vocab_size), (0, 0)))
        ids_col = flat_ids.reshape(n_total, 1)

        needed = (2 * vocab_pad * embed_dim * itemsize   # resident table bufs
                  + 2 * out_block_bytes                  # double-buffered out
                  + 2 * token_tile * 4                   # ids blocks
                  + token_tile * vocab_pad * 4           # in-kernel one-hot
                  + (2 << 20))
        cost = pl.CostEstimate(
            flops=2 * n_total * vocab_pad * embed_dim,
            transcendentals=0,
            bytes_accessed=out_bytes + table_bytes + n_total * 4)

        gathered = pl.pallas_call(
            _embed_onehot_kernel,
            out_shape=out_shape,
            grid=grid,
            in_specs=[
                pl.BlockSpec((token_tile, 1), lambda t: (t, 0)),
                # Constant index_map: table DMA'd to VMEM once, reused by
                # every grid step (each TensorCore fetches its own copy).
                pl.BlockSpec((vocab_pad, embed_dim), lambda t: (0, 0)),
            ],
            out_specs=out_spec,
            compiler_params=pltpu.CompilerParams(
                dimension_semantics=("parallel",),
                vmem_limit_bytes=_vmem_limit(needed)),
            cost_estimate=cost,
        )(ids_col, table_p)

    elif 2 * table_bytes + 4 * out_block_bytes + (2 << 20) <= _VMEM_TABLE_BUDGET:
        # ---- VMEM-resident table, grouped row gather ------------------------
        needed = 2 * table_bytes + 2 * out_block_bytes + (2 << 20)
        cost = pl.CostEstimate(
            flops=0, transcendentals=0,
            bytes_accessed=out_bytes + table_bytes + n_total * 4)

        gathered = pl.pallas_call(
            functools.partial(_embed_gather_vmem_kernel, token_tile=token_tile),
            out_shape=out_shape,
            grid=grid,
            in_specs=[
                # Whole id array in SMEM (batch*seq int32 is tiny for this
                # module); no scalar prefetch, index_maps never touch it.
                pl.BlockSpec(memory_space=pltpu.MemorySpace.SMEM),
                pl.BlockSpec((vocab_size, embed_dim), lambda t: (0, 0)),
            ],
            out_specs=out_spec,
            compiler_params=pltpu.CompilerParams(
                dimension_semantics=("parallel",),
                vmem_limit_bytes=_vmem_limit(needed)),
            cost_estimate=cost,
        )(flat_ids, weight_mat)

    else:
        # ---- HBM fallback (table does not fit VMEM, e.g. v7x 64 MiB) -------
        needed = 2 * out_block_bytes + (2 << 20)
        cost = pl.CostEstimate(
            flops=0, transcendentals=0,
            bytes_accessed=2 * out_bytes + n_total * 4)

        gathered = pl.pallas_call(
            functools.partial(_embed_gather_hbm_kernel, token_tile=token_tile),
            out_shape=out_shape,
            grid=grid,
            in_specs=[
                pl.BlockSpec(memory_space=pltpu.MemorySpace.SMEM),
                pl.BlockSpec(memory_space=pl.ANY),   # table stays in HBM
            ],
            out_specs=out_spec,
            scratch_shapes=[pltpu.SemaphoreType.DMA],
            compiler_params=pltpu.CompilerParams(
                dimension_semantics=("parallel",),
                vmem_limit_bytes=_vmem_limit(needed)),
            cost_estimate=cost,
        )(flat_ids, weight_mat)

    if n_pad:
        # The default tile picker prefers tiles that divide n_tok, so this
        # extra output-sized copy is normally avoided.
        gathered = gathered[:n_tok]
    return gathered.reshape(seq_len, batch, embed_dim)


if __name__ == "__main__":
    key = jax.random.PRNGKey(0)
    k_w, k_ids, k_w2, k_ids2 = jax.random.split(key, 4)
    pad_idx = 0

    # ---- check 1: small vocab -> one-hot / MXU path (module test shapes) ---
    batch, seq_len = 2, 8
    vocab_size, embed_dim = 40, 128
    weight_mat = jax.random.normal(k_w, (vocab_size, embed_dim), jnp.float32)
    weight_mat = weight_mat.at[pad_idx].set(0.0)   # nn.Embedding(padding_idx=0)
    ids = jax.random.randint(k_ids, (batch, seq_len), 0, vocab_size, jnp.int32)
    ids = ids.at[0, -2:].set(pad_idx)              # exercise the padding row

    out = jax.block_until_ready(embedding_layer(ids, weight_mat))
    ref = jnp.transpose(jnp.take(weight_mat, ids, axis=0), (1, 0, 2))
    assert out.shape == (seq_len, batch, embed_dim)
    assert jnp.allclose(out, ref), "one-hot path mismatch vs reference"

    # ---- check 2: larger vocab -> VMEM-resident grouped-gather path --------
    batch2, seq2 = 4, 32
    vocab2, embed2 = 4096, 128
    w2 = jax.random.normal(k_w2, (vocab2, embed2), jnp.float32)
    w2 = w2.at[pad_idx].set(0.0)
    ids2 = jax.random.randint(k_ids2, (batch2, seq2), 0, vocab2, jnp.int32)

    out2 = jax.block_until_ready(embedding_layer(ids2, w2))
    ref2 = jnp.transpose(jnp.take(w2, ids2, axis=0), (1, 0, 2))
    assert out2.shape == (seq2, batch2, embed2)
    assert jnp.allclose(out2, ref2), "gather path mismatch vs reference"

    print("KERNEL_OK")
</pallas_src>

<mosaic_0001>
module attributes {stable_mosaic.version = 11 : i64} {
  func.func @_embed_onehot_kernel(%arg0: i32, %arg1: memref<8x1xi32, #tpu.memory_space<vmem>>, %arg2: memref<128x128xf32, #tpu.memory_space<vmem>>, %arg3: memref<8x128xf32, #tpu.memory_space<vmem>>) attributes {dimension_semantics = [#tpu.dimension_semantics<parallel>], iteration_bounds = array<i64: 2>, scalar_prefetch = 0 : i64, scratch_operands = 0 : i64, tpu.core_type = #tpu.core_type<tc>, window_params = [{transform_indices = @transform_0, window_bounds = array<i64: 8, 1>}, {pipeline_mode = #tpu.pipeline_mode<synchronous>, transform_indices = @transform_1, window_bounds = array<i64: 128, 128>}, {transform_indices = @transform_2, window_bounds = array<i64: 8, 128>}]} {
    %c0 = arith.constant 0 : index
    %c0_0 = arith.constant 0 : index
    %0 = vector.load %arg1[%c0, %c0_0] : memref<8x1xi32, #tpu.memory_space<vmem>>, vector<8x1xi32>
    %1 = tpu.iota {dimensions = array<i32: 1>} : vector<8x128xi32>
    %2 = vector.broadcast %0 : vector<8x1xi32> to vector<8x128xi32>
    %3 = arith.cmpi eq, %2, %1 : vector<8x128xi32>
    %4 = arith.extui %3 : vector<8x128xi1> to vector<8x128xi32>
    %5 = arith.sitofp %4 : vector<8x128xi32> to vector<8x128xf32>
    %c0_1 = arith.constant 0 : index
    %c0_2 = arith.constant 0 : index
    %6 = vector.load %arg2[%c0_1, %c0_2] : memref<128x128xf32, #tpu.memory_space<vmem>>, vector<128x128xf32>
    %cst = arith.constant dense<0.000000e+00> : vector<8x128xf32>
    %7 = tpu.matmul %5, %6, %cst {dimension_numbers = #tpu.dot_dimension_numbers<[1], [0], [0], [1], [0, 0, 1, 1], [], []>} : vector<8x128xf32>, vector<128x128xf32>, vector<8x128xf32> -> vector<8x128xf32>
    %c0_3 = arith.constant 0 : index
    %c0_4 = arith.constant 0 : index
    %8 = vector.load %arg3[%c0_3, %c0_4] : memref<8x128xf32, #tpu.memory_space<vmem>>, vector<8x128xf32>
    tpu.vector_store %arg3[%c0_3, %c0_4], %7 {strides = array<i32>} : memref<8x128xf32, #tpu.memory_space<vmem>>, vector<8x128xf32>,
    return
  }
  func.func @transform_0(%arg0: i32) -> (i32, i32) {
    %c0_i32 = arith.constant 0 : i32
    %c0_i32_0 = arith.constant 0 : i32
    return %arg0, %c0_i32 : i32, i32
  }
  func.func @transform_1(%arg0: i32) -> (i32, i32) {
    %c0_i32 = arith.constant 0 : i32
    %c0_i32_0 = arith.constant 0 : i32
    %c0_i32_1 = arith.constant 0 : i32
    return %c0_i32, %c0_i32_0 : i32, i32
  }
  func.func @transform_2(%arg0: i32) -> (i32, i32) {
    %c0_i32 = arith.constant 0 : i32
    %c0_i32_0 = arith.constant 0 : i32
    return %arg0, %c0_i32 : i32, i32
  }
}

</mosaic_0001>

<bundles_post_ra>
// kernel: tpu_custom_call.1
= control target key start
LH: loop header
LB: loop body
LE: loop exit
PB: predicated region body
PF: predicated region fallthrough
CT: control target
= control target key end

     0   :  { %7 = vsyncpa [#allocation3], 0  ;;  %s690_s0 = inlined_call_operand.vmem [shape: s32[16,1], index: 0, kind: input, shape index: {}]   ;;  %s691_s1 = inlined_call_operand.hbm [shape: f32[128,128], index: 1, kind: input, shape index: {}]   ;;  %s692_s2 = inlined_call_operand.hbm [shape: f32[16,128], index: 2, kind: output, shape index: {}]  }
   0x1   :  { %8 = vsyncpa [#allocation4], 0 }
   0x2   :  { %10 = vsyncpa [#allocation4 + $0x1], 0  ;;  %s573_s9 = smov 0   ;;  %s575_s10 = smov 0  }
   0x3   :  { %s577_s11 = smov 0   ;;  %s579_s12 = smov 0  }
   0x4 LB: > { %s594_s13 = sadd.s32 4294967295, %s548_s12   ;;  %s335_s14 = sadd.s32 4294967294, %s548_s12   ;;  %s548_s12 = sphi %s579_s12, %s700_s12   ;;  %s544_s11 = sphi %s577_s11, %s699_s11   ;;  %s540_s10 = sphi %s575_s10, %s698_s10   ;;  %s536_s9 = sphi %s573_s9, %s697_s9  }
   0x5   : > { %s598_s15 = sadd.s32 1, %s548_s12   ;;  %s70_s16 = sadd.s32 1, %s544_s11 }
   0x6   : > { %s67_s17 = ssub.s32 %s548_s12, %s598_s15  ;;  %p80_p0 = scmp.ne.s32.totalorder %s544_s11, %s540_s10 }
   0x7   : > { %p68_p1 = scmp.eq.s32.totalorder %s67_s17, 0  ;;  %p81_p2 = scmp.eq.s32.totalorder %s594_s13, 1 }
   0x8   : > { %p86_p3 = scmp.ne.s32.totalorder %s540_s10, %s536_s9  ;;  %p87_p4 = scmp.eq.s32.totalorder %s335_s14, 1 }
   0x9   : > { %s609_s18 = scalar_select %p68_p1, %s544_s11, %s70_s16  }
   0xa   : > { %p611_p5 = por %p81_p2, %p80_p0  ;;  %p615_p6 = por %p87_p4, %p86_p3 }
   0xb   : > { %p336_p7 = scmp.ge.s32.totalorder %s548_s12, 1  ;;  %p94_p8 = scmp.lt.s32.totalorder %s548_s12, 3 }
   0xc   : > { %s694_s20 = scalar_select %p615_p6, 1, 0 }
   0xd   : > { %p415_p9 = scmp.eq.s32.totalorder %s594_s13, 0  ;;  %p622_p10 = pnand %p336_p7, %p94_p8 }
   0xe   : > { %s550_s22 = smov [#allocation2]  }
   0xf   : > { %s106_s23 = sshll.u32 %s550_s22, 4  ;;  %p407_p11 = pneg %p622_p10  ;;  %s107_s23 = int_to_ptr.vmem [resolvable:$true] %s106_s23 }
  0x10   : > { %s469_s24 = scalar_lea.vmem %s107_s23, 2048  ;;  %p477_p3 = scmp.lt.s32.totalorder %s107_s23, %s107_s23 }
  0x11   : > { %p408_p12 = pnand %p415_p9, %p407_p11  ;;  %p470_p0 = scmp.ne.s32.totalorder %s107_s23, %s469_s24 }
  0x12   : > { %p478_p4 = scmp.lt.s32.totalorder %s469_s24, %s469_s24 }
  0x13   : > { %p460_p13 = pneg %p408_p12 }
  0x14   : > { %p479_p6 = por %p478_p4, %p477_p3 }
  0x15   : > { %p472_p1 = pnand %p470_p0, %p460_p13 }
  0x17   : > { %p473_p2 = pneg %p472_p1 }
  0x19   : > { %p480_p7 = pnand %p479_p6, %p473_p2 }
  0x1b   : > { %483 = shalt.err (!%p480_p7)
}
  0x1c   : > { %s551_s25 = smov 128   ;;  %s552_s26 = smov 8  }
  0x1d   : > { %410 = dma.hbm_to_vmem [thread:$0]  (!%p408_p12), %s691_s1, 2048, %s107_s23, [#allocation3], %s551_s25, %s551_s25, %s552_s26  }
  0x1e   : > { %129 = sbr.rel (%p622_p10) target bundleno = 375 (0x177), region = 28 }
  0x23   : > { %527 = dma.done.wait (%p415_p9), [#allocation3], 2048  }
  0x24   : > { %529 = vsyncadd (%p415_p9), [#allocation3], 4294965248  ;;  %p150_p8 = scmp.lt.s32.totalorder %s594_s13, 1  ;;  %v553_v0 = vmov 0   ;;  %v554_v1 = vmov 0.0   ;;  %vm555_vm0 = vmmov 0   ;;  %v155_v19 = vlaneseq }
  0x25   : > { %457 = vset.pattern.permute.xlu0 %v553_v0  ;;  %366 = vmatprep.subr.mxu0 %v554_v1  ;;  %v178_v3 = vld [vmem:[#allocation2 + $0x78] sm:$0xff]  ;;  %v177_v4 = vld [vmem:[#allocation2 + $0x70] sm:$0xff]  ;;  %v176_v5 = vld [vmem:[#allocation2 + $0x68] sm:$0xff]  ;;  %v556_v22 = vmov 1.0   ;;  %s147_s6 = sand.u32 1, %s540_s10   ;;  %s346_s16 = sshll.u32 %s594_s13, 7 }
  0x26   : > { %s151_s29 = scalar_select %p150_p8, %s594_s13, 1  ;;  %398 = vmatprep.mubr.msk.f32.mxu0 %vm555_vm0, %v554_v1  ;;  %367 = vmatpush3.msra.mxu0 %v178_v3  ;;  %v175_v6 = vld [vmem:[#allocation2 + $0x60] sm:$0xff]  ;;  %v174_v7 = vld [vmem:[#allocation2 + $0x58] sm:$0xff]  ;;  %v173_v8 = vld [vmem:[#allocation2 + $0x50] sm:$0xff]  ;;  %v156_v20 = vand.u32 127, %v155_v19 }
  0x27   : > { %368 = vmatprep.subr.mxu0 %v554_v1  ;;  %v172_v9 = vld [vmem:[#allocation2 + $0x48] sm:$0xff]  ;;  %v171_v10 = vld [vmem:[#allocation2 + $0x40] sm:$0xff]  ;;  %v170_v11 = vld [vmem:[#allocation2 + $0x38] sm:$0xff]  ;;  %s341_s7 = sshll.u32 %s147_s6, 3  ;;  %s651_s22 = scalar_lea.hbm %s692_s2, %s346_s16 }
  0x28   : > { %s342_s30 = sshll.u32 %s151_s29, 3  ;;  %369 = vmatpush3.msra.mxu0 %v177_v4  ;;  %v169_v12 = vld [vmem:[#allocation2 + $0x30] sm:$0xff]  ;;  %v168_v13 = vld [vmem:[#allocation2 + $0x28] sm:$0xff]  ;;  %v167_v14 = vld [vmem:[#allocation2 + $0x20] sm:$0xff]  ;;  %s149_s8 = scalar_lea.vmem [#allocation5], %s341_s7 }
  0x29   : > { %s153_s5 = scalar_lea.vmem %s690_s0, %s342_s30  ;;  %370 = vmatprep.subr.mxu0 %v554_v1  ;;  %v166_v15 = vld [vmem:[#allocation2 + $0x18] sm:$0xff]  ;;  %v165_v16 = vld [vmem:[#allocation2 + $0x10] sm:$0xff]  ;;  %v164_v17 = vld [vmem:[#allocation2 + $0x8] sm:$0xff]  ;;  %s264_s14 = sshll.u32 %s149_s8, 4  ;;  %s646_s14 = int_to_ptr.vmem [resolvable:$true] %s264_s14 }
  0x2a   : > { %v154_v2 = vld [vmem:[%s153_s5] sm:$0xff]  ;;  %371 = vmatpush3.msra.mxu0 %v176_v5  ;;  %s251_s23 = scalar_lea.sflag [#allocation4], %s147_s6  ;;  %s484_s24 = scalar_lea.vmem %s646_s14, 128 }
  0x2b   : > { %158 = vperm.xlu0 %457, %v154_v2   ;;  %372 = vmatprep.subr.mxu0 %v554_v1  ;;  %v163_v18 = vld [vmem:[#allocation2] sm:$0xff]  ;;  %p485_p6 = scmp.ne.s32.totalorder %s646_s14, %s484_s24  ;;  %s557_s13 = smov [#allocation5]  }
  0x2c   : > { %373 = vmatpush3.msra.mxu0 %v175_v6  ;;  %s488_s25 = sshll.u32 %s557_s13, 4  ;;  %s489_s25 = int_to_ptr.vmem [resolvable:$false] %s488_s25 }
  0x2d   : > { %374 = vmatprep.subr.mxu0 %v554_v1  ;;  %p486_p9 = pnand %p485_p6, %p611_p5  ;;  %s490_s26 = scalar_lea.vmem %s489_s25, 256 }
  0x2e   : > { %375 = vmatpush3.msra.mxu0 %v174_v7  ;;  %p491_p11 = scmp.lt.s32.totalorder %s646_s14, %s489_s25  ;;  %p492_p12 = scmp.lt.s32.totalorder %s490_s26, %s484_s24 }
  0x2f   : > { %376 = vmatprep.subr.mxu0 %v554_v1  ;;  %p487_p10 = pneg %p486_p9 }
  0x30   : > { %377 = vmatpush3.msra.mxu0 %v173_v8  ;;  %p493_p13 = por %p492_p12, %p491_p11 }
  0x31   : > { %378 = vmatprep.subr.mxu0 %v554_v1 }
  0x32   : > { %379 = vmatpush3.msra.mxu0 %v172_v9  ;;  %p494_p0 = pnand %p493_p13, %p487_p10 }
  0x33   : > { %380 = vmatprep.subr.mxu0 %v554_v1 }
  0x34   : > { %381 = vmatpush3.msra.mxu0 %v171_v10 }
  0x35   : > { %382 = vmatprep.subr.mxu0 %v554_v1 }
  0x36   : > { %383 = vmatpush3.msra.mxu0 %v170_v11 }
  0x37   : > { %384 = vmatprep.subr.mxu0 %v554_v1 }
  0x38   : > { %385 = vmatpush3.msra.mxu0 %v169_v12 }
  0x39   : > { %386 = vmatprep.subr.mxu0 %v554_v1 }
  0x3a   : > { %387 = vmatpush3.msra.mxu0 %v168_v13 }
  0x3b   : > { %388 = vmatprep.subr.mxu0 %v554_v1 }
  0x3c   : > { %389 = vmatpush3.msra.mxu0 %v167_v14 }
  0x3d   : > { %390 = vmatprep.subr.mxu0 %v554_v1 }
  0x3e   : > { %391 = vmatpush3.msra.mxu0 %v166_v15 }
  0x3f   : > { %392 = vmatprep.subr.mxu0 %v554_v1 }
  0x40   : > { %393 = vmatpush3.msra.mxu0 %v165_v16 }
  0x41   : > { %394 = vmatprep.subr.mxu0 %v554_v1 }
  0x42   : > { %395 = vmatpush3.msra.mxu0 %v164_v17 }
  0x43   : > { %396 = vmatprep.subr.mxu0 %v554_v1 }
  0x44   : > { %397 = vmatpush3.msra.mxu0 %v163_v18 }
  0xa6   : > { %v159_v21 = vpop.permute.xlu0 %158 }
  0xa7   : > { %vm160_vm1 = vcmp.eq.s32.totalorder %v159_v21, %v156_v20 }
  0xa8   : > { %399 = vmatmul.mubr.msk.f32.vlgmr.msra.gmra.mxu0 %vm160_vm1, %v556_v22 }
 0x168   : > { %v245_v23 = vpop.f32.mrf.mxu0 }
 0x169   : > { %249 = vst [vmem:[%s149_s8] sm:$0xff] %v245_v23 }
 0x16a   : > { %v400_v24 = vpop.f32.mrf.mxu0 }
 0x16b   : > { %497 = shalt.err (!%p494_p0)
}
 0x16c   : > { %s498_s27 = scalar_lea.hbm %s651_s22, 128  ;;  %s502_s30 = scalar_lea.hbm %s692_s2, 256 }
 0x16d   : > { %p499_p1 = scmp.ne.s32.totalorder %s651_s22, %s498_s27  ;;  %p503_p4 = scmp.lt.s32.totalorder %s651_s22, %s692_s2 }
 0x16e   : > { %p504_p7 = scmp.lt.s32.totalorder %s502_s30, %s498_s27 }
 0x16f   : > { %p500_p2 = pnand %p499_p1, %p611_p5 }
 0x170   : > { %p505_p8 = por %p504_p7, %p503_p4 }
 0x171   : > { %p501_p3 = pneg %p500_p2 }
 0x173   : > { %p506_p6 = pnand %p505_p8, %p501_p3 }
 0x175   : > { %509 = shalt.err (!%p506_p6)
}
 0x176   : > { %405 = dma.vmem_to_hbm [thread:$0]  (%p611_p5), %s646_s14, 128, %s651_s22, %s251_s23  }
 0x177 PF: > { %p417_p9 = scmp.ge.s32.totalorder %s548_s12, 2  ;;  %s276_s5 = sand.u32 1, %s536_s9  }
 0x178   : > { %p696_p10 = scmp.ne.s32.totalorder %s694_s20, 0  ;;  %s277_s6 = scalar_lea.sflag [#allocation4], %s276_s5 }
 0x17a   : > { %p412_p11 = pnand %p417_p9, %p696_p10 }
 0x17c   : > { %p413_p12 = pneg %p412_p11 }
 0x17e   : > { %531 = dma.done.wait (%p413_p12), %s277_s6, 128  }
 0x17f   : > { %533 = vsyncadd (%p413_p12), %s277_s6, 4294967168  ;;  %p13_p13 = scmp.ge.s32.totalorder %s598_s15, 4   ;;  %s697_s9 = smov %s540_s10 }
 0x180   : > { %s698_s10 = smov %s544_s11  ;;  %s699_s11 = smov %s609_s18 }
 0x181   : > { %s700_s12 = smov %s598_s15  ;;  %15 = sbr.rel (!%p13_p13) target bundleno = 4 (0x4), region = 68 }
 0x186   :  { %282 = vsyncpa [#allocation3], 1 }
 0x187   :  { %284 = vsyncpa [#allocation3 + $0x1], 1 }
 0x188   :  { %285 = vsyncpa [#allocation4], 1 }
 0x189   :  { %287 = vsyncpa [#allocation4 + $0x1], 1 }

</bundles_post_ra>
